<compile_context>
chip_gen: v5e
topology: v5e:2x2
jax: 0.10.0
libtpu: 0.0.40
codegen_flags: <defaults>
</compile_context>

<pallas_src>
import functools

import jax
import jax.numpy as jnp
from jax.experimental import pallas as pl
from jax.experimental.pallas import tpu as pltpu


def _llama_mlp_kernel(x_ref, wgu_ref, wd_ref, o_ref, acc_ref):
    # x_ref:   (tm, H)       bf16 input row tile
    # wgu_ref: (H, 2*ti)     fused [gate | up] weight tile (bf16, x @ W layout)
    # wd_ref:  (ti, H)       down_proj weight tile (bf16, x @ W layout)
    # o_ref:   (tm, H)       output row tile (written on the last I-tile)
    # acc_ref: (tm, H) f32   down_proj accumulator, persists across the I axis
    j = pl.program_id(1)

    @pl.when(j == 0)
    def _():
        acc_ref[...] = jnp.zeros_like(acc_ref)

    ti = wd_ref.shape[0]
    x = x_ref[...]

    # One MXU pass computes both gate and up projections (f32 accumulation).
    gu = jnp.dot(x, wgu_ref[...], preferred_element_type=jnp.float32)  # (tm, 2*ti)
    g = gu[:, :ti]
    u = gu[:, ti:]

    # SiLU(g) * u = g * sigmoid(g) * u.
    # exp -> EUP, approx reciprocal -> EUP slot; multiplies on the VPU.
    h = g * pl.reciprocal(1.0 + jnp.exp(-g), approx=True) * u

    acc_ref[...] += jnp.dot(h.astype(wd_ref.dtype), wd_ref[...],
                            preferred_element_type=jnp.float32)

    @pl.when(j == pl.num_programs(1) - 1)
    def _():
        o_ref[...] = acc_ref[...].astype(o_ref.dtype)


def _round_up(a, b):
    return (a + b - 1) // b * b


def choose_i_tile(intermediate_size, ti_max=512):
    """Pick an I-tile: multiple of 128, divides I, <= ti_max (VMEM-friendly)."""
    assert intermediate_size % 128 == 0, "intermediate_size must be a multiple of 128"
    ti = min(ti_max, intermediate_size)
    ti -= ti % 128
    while intermediate_size % ti != 0:
        ti -= 128
    return ti


def prepare_llama_mlp_weights(w_gate, w_up, w_down, *, ti, dtype=jnp.bfloat16):
    """One-time weight prep (do at load time, NOT per forward call).

    w_gate, w_up: [I, H]; w_down: [H, I]   (PyTorch nn.Linear [out, in] layout).
    Returns:
      w_gu: [ (I // ti) * H, 2*ti ]  per-I-tile fused [gate | up] for x @ W
      wd_t: [ I, H ]                 down_proj transposed for x @ W
    """
    I, H = w_gate.shape
    assert I % ti == 0
    n_i = I // ti
    wg_t = jnp.asarray(w_gate).T.astype(dtype)                 # [H, I]
    wu_t = jnp.asarray(w_up).T.astype(dtype)                   # [H, I]
    wg_tiles = wg_t.reshape(H, n_i, ti).transpose(1, 0, 2)     # [n_i, H, ti]
    wu_tiles = wu_t.reshape(H, n_i, ti).transpose(1, 0, 2)     # [n_i, H, ti]
    w_gu = jnp.concatenate([wg_tiles, wu_tiles], axis=-1)      # [n_i, H, 2*ti]
    w_gu = w_gu.reshape(n_i * H, 2 * ti)                       # plain 2-D for BlockSpec
    wd_t = jnp.asarray(w_down).T.astype(dtype)                 # [I, H]
    return w_gu, wd_t


@functools.partial(jax.jit, static_argnames=("tm",))
def llama_mlp(x, w_gu, wd_t, *, tm=256):
    """x: [M, H] -> [M, H];  w_gu / wd_t from prepare_llama_mlp_weights."""
    M, H = x.shape
    I, H2 = wd_t.shape
    assert H2 == H
    two_ti = w_gu.shape[1]
    ti = two_ti // 2
    assert I % ti == 0
    n_i = I // ti
    assert w_gu.shape == (n_i * H, two_ti)
    assert H % 128 == 0 and ti % 128 == 0

    # Adapt the row tile for small batches (keep a multiple of 8 sublanes), pad M.
    tm = min(tm, _round_up(M, 8))
    m_pad = _round_up(M, tm)

    x_in = x.astype(jnp.bfloat16)
    if m_pad != M:
        x_in = jnp.pad(x_in, ((0, m_pad - M), (0, 0)))

    out_dtype = x.dtype

    # Double-buffered tiles + f32 accumulator, with headroom for compiler scratch.
    est = (2 * tm * H * 2                                      # x tile
           + 2 * H * two_ti * 2                                # fused gate|up tile
           + 2 * ti * H * 2                                    # down tile
           + 2 * tm * H * jnp.dtype(out_dtype).itemsize        # output tile
           + tm * H * 4)                                       # accumulator
    vmem_limit = max(32 << 20, min(est * 5 // 4, 100 << 20))

    out = pl.pallas_call(
        _llama_mlp_kernel,
        out_shape=jax.ShapeDtypeStruct((m_pad, H), out_dtype),
        grid_spec=pltpu.PrefetchScalarGridSpec(
            num_scalar_prefetch=0,
            grid=(m_pad // tm, n_i),                 # reduction axis (I tiles) last
            in_specs=[
                pl.BlockSpec((tm, H), lambda i, j: (i, 0)),        # x rows
                pl.BlockSpec((H, two_ti), lambda i, j: (j, 0)),    # [gate | up] tile
                pl.BlockSpec((ti, H), lambda i, j: (j, 0)),        # down tile
            ],
            out_specs=pl.BlockSpec((tm, H), lambda i, j: (i, 0)),
            scratch_shapes=[pltpu.VMEM((tm, H), jnp.float32)],
        ),
        compiler_params=pltpu.CompilerParams(
            dimension_semantics=("parallel", "arbitrary"),
            vmem_limit_bytes=vmem_limit,
        ),
    )(x_in, w_gu, wd_t)

    return out[:M] if m_pad != M else out


def llama_mlp_ref(x, w_gate, w_up, w_down):
    g = x @ w_gate.T
    u = x @ w_up.T
    return (g * jax.nn.sigmoid(g) * u) @ w_down.T


if __name__ == "__main__":
    # Small config consistent with the module: hidden_size=128, intermediate_size=256.
    M, H, I = 8, 128, 256

    key = jax.random.PRNGKey(0)
    kx, kg, ku, kd = jax.random.split(key, 4)

    x = jax.random.normal(kx, (M, H), dtype=jnp.float32)
    # PyTorch nn.Linear weight layout: [out_features, in_features]
    w_gate = jax.random.normal(kg, (I, H), dtype=jnp.float32) * 0.05
    w_up = jax.random.normal(ku, (I, H), dtype=jnp.float32) * 0.05
    w_down = jax.random.normal(kd, (H, I), dtype=jnp.float32) * 0.05

    # One-time weight prep (transpose + bf16 + fused gate|up packing).
    ti = choose_i_tile(I)
    w_gu, wd_t = prepare_llama_mlp_weights(w_gate, w_up, w_down, ti=ti)

    out = llama_mlp(x, w_gu, wd_t)
    out = jax.block_until_ready(out)

    ref = llama_mlp_ref(x, w_gate, w_up, w_down)
    assert out.shape == (M, H)
    # bf16 MXU operands (mirrors the module's opt path) vs f32 reference.
    assert jnp.allclose(out, ref, atol=2e-2, rtol=2e-2), "mismatch vs reference"

    print("KERNEL_OK")
</pallas_src>

<mosaic_0001>
module attributes {stable_mosaic.version = 11 : i64} {
  func.func @_llama_mlp_kernel(%arg0: i32, %arg1: i32, %arg2: memref<8x128xbf16, #tpu.memory_space<vmem>>, %arg3: memref<128x512xbf16, #tpu.memory_space<vmem>>, %arg4: memref<256x128xbf16, #tpu.memory_space<vmem>>, %arg5: memref<8x128xf32, #tpu.memory_space<vmem>>, %arg6: memref<8x128xf32, #tpu.memory_space<vmem>>) attributes {dimension_semantics = [#tpu.dimension_semantics<parallel>, #tpu.dimension_semantics<arbitrary>], iteration_bounds = array<i64: 1, 1>, scalar_prefetch = 0 : i64, scratch_operands = 1 : i64, tpu.core_type = #tpu.core_type<tc>, window_params = [{transform_indices = @transform_0, window_bounds = array<i64: 8, 128>}, {transform_indices = @transform_1, window_bounds = array<i64: 128, 512>}, {transform_indices = @transform_2, window_bounds = array<i64: 256, 128>}, {transform_indices = @transform_3, window_bounds = array<i64: 8, 128>}]} {
    %c0_i32 = arith.constant 0 : i32
    %0 = arith.cmpi eq, %arg1, %c0_i32 : i32
    %1 = arith.extui %0 : i1 to i32
    %c0_i32_0 = arith.constant 0 : i32
    %2 = arith.cmpi ne, %1, %c0_i32_0 : i32
    scf.if %2 {
      %cst_15 = arith.constant 0.000000e+00 : f32
      %25 = vector.broadcast %cst_15 : f32 to vector<8x128xf32>
      %c0_16 = arith.constant 0 : index
      %c0_17 = arith.constant 0 : index
      %26 = vector.load %arg6[%c0_16, %c0_17] : memref<8x128xf32, #tpu.memory_space<vmem>>, vector<8x128xf32>
      tpu.vector_store %arg6[%c0_16, %c0_17], %25 {strides = array<i32>} : memref<8x128xf32, #tpu.memory_space<vmem>>, vector<8x128xf32>,
    } else {
    }
    %c0 = arith.constant 0 : index
    %c0_1 = arith.constant 0 : index
    %3 = vector.load %arg2[%c0, %c0_1] : memref<8x128xbf16, #tpu.memory_space<vmem>>, vector<8x128xbf16>
    %c0_2 = arith.constant 0 : index
    %c0_3 = arith.constant 0 : index
    %4 = vector.load %arg3[%c0_2, %c0_3] : memref<128x512xbf16, #tpu.memory_space<vmem>>, vector<128x512xbf16>
    %cst = arith.constant dense<0.000000e+00> : vector<8x512xf32>
    %5 = tpu.matmul %3, %4, %cst {dimension_numbers = #tpu.dot_dimension_numbers<[1], [0], [0], [1], [0, 0, 1, 1], [], []>} : vector<8x128xbf16>, vector<128x512xbf16>, vector<8x512xf32> -> vector<8x512xf32>
    %6 = vector.extract_strided_slice %5 {offsets = [0, 0], sizes = [8, 256], strides = [1, 1]} : vector<8x512xf32> to vector<8x256xf32>
    %7 = vector.extract_strided_slice %5 {offsets = [0, 256], sizes = [8, 256], strides = [1, 1]} : vector<8x512xf32> to vector<8x256xf32>
    %cst_4 = arith.constant 0.000000e+00 : f32
    %8 = vector.broadcast %cst_4 : f32 to vector<8x256xf32>
    %9 = arith.subf %8, %6 : vector<8x256xf32>
    %10 = math.exp %9 : vector<8x256xf32>
    %cst_5 = arith.constant 1.000000e+00 : f32
    %11 = vector.broadcast %cst_5 : f32 to vector<8x256xf32>
    %12 = arith.addf %11, %10 : vector<8x256xf32>
    %13 = tpu.reciprocal %12 {approx = true} : vector<8x256xf32> -> vector<8x256xf32>
    %14 = arith.mulf %6, %13 : vector<8x256xf32>
    %15 = arith.mulf %14, %7 : vector<8x256xf32>
    %c0_6 = arith.constant 0 : index
    %c0_7 = arith.constant 0 : index
    %16 = vector.load %arg6[%c0_6, %c0_7] : memref<8x128xf32, #tpu.memory_space<vmem>>, vector<8x128xf32>
    %17 = arith.truncf %15 : vector<8x256xf32> to vector<8x256xbf16>
    %c0_8 = arith.constant 0 : index
    %c0_9 = arith.constant 0 : index
    %18 = vector.load %arg4[%c0_8, %c0_9] : memref<256x128xbf16, #tpu.memory_space<vmem>>, vector<256x128xbf16>
    %cst_10 = arith.constant dense<0.000000e+00> : vector<8x128xf32>
    %19 = tpu.matmul %17, %18, %cst_10 {dimension_numbers = #tpu.dot_dimension_numbers<[1], [0], [0], [1], [0, 0, 1, 1], [], []>} : vector<8x256xbf16>, vector<256x128xbf16>, vector<8x128xf32> -> vector<8x128xf32>
    %20 = arith.addf %16, %19 : vector<8x128xf32>
    %c0_11 = arith.constant 0 : index
    %c0_12 = arith.constant 0 : index
    %21 = vector.load %arg6[%c0_11, %c0_12] : memref<8x128xf32, #tpu.memory_space<vmem>>, vector<8x128xf32>
    tpu.vector_store %arg6[%c0_11, %c0_12], %20 {strides = array<i32>} : memref<8x128xf32, #tpu.memory_space<vmem>>, vector<8x128xf32>,
    %c0_i32_13 = arith.constant 0 : i32
    %22 = arith.cmpi eq, %arg1, %c0_i32_13 : i32
    %23 = arith.extui %22 : i1 to i32
    %c0_i32_14 = arith.constant 0 : i32
    %24 = arith.cmpi ne, %23, %c0_i32_14 : i32
    scf.if %24 {
      %c0_15 = arith.constant 0 : index
      %c0_16 = arith.constant 0 : index
      %25 = vector.load %arg6[%c0_15, %c0_16] : memref<8x128xf32, #tpu.memory_space<vmem>>, vector<8x128xf32>
      %c0_17 = arith.constant 0 : index
      %c0_18 = arith.constant 0 : index
      %26 = vector.load %arg5[%c0_17, %c0_18] : memref<8x128xf32, #tpu.memory_space<vmem>>, vector<8x128xf32>
      tpu.vector_store %arg5[%c0_17, %c0_18], %25 {strides = array<i32>} : memref<8x128xf32, #tpu.memory_space<vmem>>, vector<8x128xf32>,
    } else {
    }
    return
  }
  func.func @transform_0(%arg0: i32, %arg1: i32) -> (i32, i32) {
    %c0_i32 = arith.constant 0 : i32
    %c0_i32_0 = arith.constant 0 : i32
    return %arg0, %c0_i32 : i32, i32
  }
  func.func @transform_1(%arg0: i32, %arg1: i32) -> (i32, i32) {
    %c0_i32 = arith.constant 0 : i32
    %c0_i32_0 = arith.constant 0 : i32
    return %arg1, %c0_i32 : i32, i32
  }
  func.func @transform_2(%arg0: i32, %arg1: i32) -> (i32, i32) {
    %c0_i32 = arith.constant 0 : i32
    %c0_i32_0 = arith.constant 0 : i32
    return %arg1, %c0_i32 : i32, i32
  }
  func.func @transform_3(%arg0: i32, %arg1: i32) -> (i32, i32) {
    %c0_i32 = arith.constant 0 : i32
    %c0_i32_0 = arith.constant 0 : i32
    return %arg0, %c0_i32 : i32, i32
  }
}

</mosaic_0001>

<bundles_post_ra>
// kernel: llama_mlp.1
= control target key start
LH: loop header
LB: loop body
LE: loop exit
PB: predicated region body
PF: predicated region fallthrough
CT: control target
= control target key end

     0   :  { %8 = vsyncpa [#allocation4], 0  ;;  %s865_s0 = inlined_call_operand.vmem [shape: bf16[8,128], index: 0, kind: input, shape index: {}]   ;;  %s866_s1 = inlined_call_operand.hbm [shape: bf16[128,512], index: 1, kind: input, shape index: {}]   ;;  %s867_s2 = inlined_call_operand.hbm [shape: bf16[256,128], index: 2, kind: input, shape index: {}]   ;;  %s868_s3 = inlined_call_operand.hbm [shape: f32[8,128], index: 3, kind: output, shape index: {}]  }
   0x1   :  { %9 = vsyncpa [#allocation7], 0 }
   0x2   :  { %10 = vsyncpa [#allocation5], 0  ;;  %s17_s14 = sshll.u32 %s866_s1, 4  ;;  %s826_s15 = smov [#allocation3]   ;;  %s18_s14 = int_to_ptr.hbm [resolvable:$true] %s17_s14 }
   0x3   :  { %s19_s16 = sshll.u32 %s826_s15, 4  ;;  %s30_s19 = sshll.u32 %s867_s2, 4  ;;  %s20_s16 = int_to_ptr.vmem [resolvable:$true] %s19_s16  ;;  %s31_s19 = int_to_ptr.hbm [resolvable:$true] %s30_s19 }
   0x4   :  { %s827_s20 = smov 256   ;;  %s828_s21 = smov 16  }
   0x5   :  { %25 = dma.hbm_to_vmem [thread:$0]  %s18_s14, 4096, %s20_s16, [#allocation4], %s827_s20, %s827_s20, %s828_s21  }
   0x6   :  { %s829_s22 = smov [#allocation6]   ;;  %s830_s24 = smov 64  }
   0x7   :  { %s32_s23 = sshll.u32 %s829_s22, 4  ;;  %s831_s25 = smov 4   ;;  %s33_s23 = int_to_ptr.vmem [resolvable:$true] %s32_s23 }
   0x8   :  { %38 = dma.hbm_to_vmem [thread:$0]  %s31_s19, 2048, %s33_s23, [#allocation7], %s830_s24, %s830_s24, %s831_s25  }
   0x9   :  { %820 = dma.done.wait [#allocation4], 4096  }
   0xa   :  { %821 = vsyncadd [#allocation4], 4294963200 }
   0xb   :  { %822 = dma.done.wait [#allocation7], 2048  }
   0xc   :  { %823 = vsyncadd [#allocation7], 4294965248  ;;  %v607_v0 = vld [vmem:[#allocation3 + $0xe0] sm:$0xf]  ;;  %v715_v1 = vld [vmem:[#allocation3 + $0xec] sm:$0xf0] }
   0xd   :  { %v713_v2 = vld [vmem:[#allocation3 + $0xe4] sm:$0xf]  ;;  %v608_v3 = vor.u32 %v715_v1, %v607_v0  ;;  %v609_v4 = vld [vmem:[#allocation3 + $0xf0] sm:$0xf0]  ;;  %v591_v5 = vld [vmem:[#allocation3 + $0xc0] sm:$0xf] }
   0xe   :  { %v711_v6 = vld [vmem:[#allocation3 + $0xcc] sm:$0xf0]  ;;  %v612_v7 = vor.u32 %v713_v2, %v609_v4  ;;  %v709_v8 = vld [vmem:[#allocation3 + $0xc4] sm:$0xf]  ;;  %v593_v9 = vld [vmem:[#allocation3 + $0xd0] sm:$0xf0] }
   0xf   :  { %245 = vmatpush.bf16.msra.mxu0 %v608_v3  ;;  %v592_v10 = vor.u32 %v711_v6, %v591_v5  ;;  %v575_v11 = vld [vmem:[#allocation3 + $0xa0] sm:$0xf]  ;;  %v707_v12 = vld [vmem:[#allocation3 + $0xac] sm:$0xf0]  ;;  %v596_v13 = vor.u32 %v709_v8, %v593_v9  ;;  %v615_v14 = vld [vmem:[#allocation3 + $0xe8] sm:$0xf] }
  0x10   :  { %258 = vmatpush.bf16.msra.mxu1 %v612_v7  ;;  %v716_v15 = vld [vmem:[#allocation3 + $0xf4] sm:$0xf0]  ;;  %v714_v16 = vld [vmem:[#allocation3 + $0xec] sm:$0xf]  ;;  %v705_v17 = vld [vmem:[#allocation3 + $0xa4] sm:$0xf]  ;;  %v576_v23 = vor.u32 %v707_v12, %v575_v11 }
  0x11   :  { %v577_v18 = vld [vmem:[#allocation3 + $0xb0] sm:$0xf0]  ;;  %v616_v19 = vor.u32 %v716_v15, %v615_v14  ;;  %v617_v20 = vld [vmem:[#allocation3 + $0xf8] sm:$0xf0]  ;;  %v599_v22 = vld [vmem:[#allocation3 + $0xc8] sm:$0xf] }
  0x12   :  { %v620_v21 = vor.u32 %v714_v16, %v617_v20  ;;  %v712_v24 = vld [vmem:[#allocation3 + $0xd4] sm:$0xf0]  ;;  %v710_v25 = vld [vmem:[#allocation3 + $0xcc] sm:$0xf]  ;;  %v601_v26 = vld [vmem:[#allocation3 + $0xd8] sm:$0xf0]  ;;  %v580_v27 = vor.u32 %v705_v17, %v577_v18 }
  0x13   :  { %246 = vmatpush.bf16.msra.mxu0 %v592_v10  ;;  %271 = vmatpush.bf16.msra.mxu2 %v616_v19  ;;  %v559_v28 = vld [vmem:[#allocation3 + $0x80] sm:$0xf]  ;;  %v703_v29 = vld [vmem:[#allocation3 + $0x8c] sm:$0xf0]  ;;  %v701_v30 = vld [vmem:[#allocation3 + $0x84] sm:$0xf]  ;;  %v600_v31 = vor.u32 %v712_v24, %v599_v22  ;;  %v604_v32 = vor.u32 %v710_v25, %v601_v26 }
  0x14   :  { %259 = vmatpush.bf16.msra.mxu1 %v596_v13  ;;  %284 = vmatpush.bf16.msra.mxu3 %v620_v21  ;;  %v561_v33 = vld [vmem:[#allocation3 + $0x90] sm:$0xf0]  ;;  %v583_v34 = vld [vmem:[#allocation3 + $0xa8] sm:$0xf]  ;;  %v708_v35 = vld [vmem:[#allocation3 + $0xb4] sm:$0xf0]  ;;  %v560_v38 = vor.u32 %v703_v29, %v559_v28 }
  0x15   :  { %v706_v36 = vld [vmem:[#allocation3 + $0xac] sm:$0xf]  ;;  %v585_v37 = vld [vmem:[#allocation3 + $0xb8] sm:$0xf0]  ;;  %v543_v39 = vld [vmem:[#allocation3 + $0x60] sm:$0xf]  ;;  %v584_v41 = vor.u32 %v708_v35, %v583_v34  ;;  %v564_v42 = vor.u32 %v701_v30, %v561_v33 }
  0x16   :  { %v699_v40 = vld [vmem:[#allocation3 + $0x6c] sm:$0xf0]  ;;  %v697_v43 = vld [vmem:[#allocation3 + $0x64] sm:$0xf]  ;;  %v588_v44 = vor.u32 %v706_v36, %v585_v37  ;;  %v567_v45 = vld [vmem:[#allocation3 + $0x88] sm:$0xf] }
  0x17   :  { %247 = vmatpush.bf16.msra.mxu0 %v576_v23  ;;  %272 = vmatpush.bf16.msra.mxu2 %v600_v31  ;;  %v704_v46 = vld [vmem:[#allocation3 + $0x94] sm:$0xf0]  ;;  %v545_v47 = vld [vmem:[#allocation3 + $0x70] sm:$0xf0]  ;;  %v702_v48 = vld [vmem:[#allocation3 + $0x8c] sm:$0xf]  ;;  %v544_v50 = vor.u32 %v699_v40, %v543_v39 }
  0x18   :  { %260 = vmatpush.bf16.msra.mxu1 %v580_v27  ;;  %285 = vmatpush.bf16.msra.mxu3 %v604_v32  ;;  %v569_v49 = vld [vmem:[#allocation3 + $0x98] sm:$0xf0]  ;;  %v527_v51 = vld [vmem:[#allocation3 + $0x40] sm:$0xf]  ;;  %v695_v52 = vld [vmem:[#allocation3 + $0x4c] sm:$0xf0]  ;;  %v568_v53 = vor.u32 %v704_v46, %v567_v45  ;;  %v548_v54 = vor.u32 %v697_v43, %v545_v47 }
  0x19   :  { %v693_v55 = vld [vmem:[#allocation3 + $0x44] sm:$0xf]  ;;  %v572_v56 = vor.u32 %v702_v48, %v569_v49  ;;  %v551_v57 = vld [vmem:[#allocation3 + $0x68] sm:$0xf]  ;;  %v700_v58 = vld [vmem:[#allocation3 + $0x74] sm:$0xf0]  ;;  %v528_v62 = vor.u32 %v695_v52, %v527_v51 }
  0x1a   :  { %v529_v59 = vld [vmem:[#allocation3 + $0x50] sm:$0xf0]  ;;  %v698_v60 = vld [vmem:[#allocation3 + $0x6c] sm:$0xf]  ;;  %v553_v61 = vld [vmem:[#allocation3 + $0x78] sm:$0xf0]  ;;  %v552_v1 = vor.u32 %v700_v58, %v551_v57 }
  0x1b   :  { %248 = vmatpush.bf16.msra.mxu0 %v560_v38  ;;  %273 = vmatpush.bf16.msra.mxu2 %v584_v41  ;;  %v511_v63 = vld [vmem:[#allocation3 + $0x20] sm:$0xf]  ;;  %v691_v0 = vld [vmem:[#allocation3 + $0x2c] sm:$0xf0]  ;;  %v532_v2 = vor.u32 %v693_v55, %v529_v59  ;;  %v689_v3 = vld [vmem:[#allocation3 + $0x24] sm:$0xf]  ;;  %v556_v4 = vor.u32 %v698_v60, %v553_v61 }
  0x1c   :  { %261 = vmatpush.bf16.msra.mxu1 %v564_v42  ;;  %286 = vmatpush.bf16.msra.mxu3 %v588_v44  ;;  %v535_v5 = vld [vmem:[#allocation3 + $0x48] sm:$0xf]  ;;  %v696_v6 = vld [vmem:[#allocation3 + $0x54] sm:$0xf0]  ;;  %v513_v7 = vld [vmem:[#allocation3 + $0x30] sm:$0xf0]  ;;  %v512_v10 = vor.u32 %v691_v0, %v511_v63 }
  0x1d   :  { %v694_v8 = vld [vmem:[#allocation3 + $0x4c] sm:$0xf]  ;;  %v537_v9 = vld [vmem:[#allocation3 + $0x58] sm:$0xf0]  ;;  %v495_v11 = vld [vmem:[#allocation3] sm:$0xf]  ;;  %v536_v13 = vor.u32 %v696_v6, %v535_v5  ;;  %v516_v14 = vor.u32 %v689_v3, %v513_v7 }
  0x1e   :  { %v687_v12 = vld [vmem:[#allocation3 + $0xc] sm:$0xf0]  ;;  %v685_v15 = vld [vmem:[#allocation3 + $0x4] sm:$0xf]  ;;  %v540_v16 = vor.u32 %v694_v8, %v537_v9  ;;  %v519_v17 = vld [vmem:[#allocation3 + $0x28] sm:$0xf] }
  0x1f   :  { %249 = vmatpush.bf16.msra.mxu0 %v544_v50  ;;  %274 = vmatpush.bf16.msra.mxu2 %v568_v53  ;;  %v692_v18 = vld [vmem:[#allocation3 + $0x34] sm:$0xf0]  ;;  %v497_v19 = vld [vmem:[#allocation3 + $0x10] sm:$0xf0]  ;;  %v690_v20 = vld [vmem:[#allocation3 + $0x2c] sm:$0xf]  ;;  %v496_v22 = vor.u32 %v687_v12, %v495_v11 }
  0x20   :  { %262 = vmatpush.bf16.msra.mxu1 %v548_v54  ;;  %287 = vmatpush.bf16.msra.mxu3 %v572_v56  ;;  %v521_v21 = vld [vmem:[#allocation3 + $0x38] sm:$0xf0]  ;;  %v520_v23 = vor.u32 %v692_v18, %v519_v17  ;;  %v500_v24 = vor.u32 %v685_v15, %v497_v19  ;;  %v503_v26 = vld [vmem:[#allocation3 + $0x8] sm:$0xf]  ;;  %v688_v27 = vld [vmem:[#allocation3 + $0x14] sm:$0xf0] }
  0x21   :  { %v524_v25 = vor.u32 %v690_v20, %v521_v21  ;;  %v686_v28 = vld [vmem:[#allocation3 + $0xc] sm:$0xf]  ;;  %v505_v29 = vld [vmem:[#allocation3 + $0x18] sm:$0xf0]  ;;  %v52_v32 = vld [vmem:[%s865_s0] sm:$0xf]  ;;  %v504_v33 = vor.u32 %v688_v27, %v503_v26 }
  0x22   :  { %v724_v30 = vld [vmem:[#allocation6 + $0x38] sm:$0xff]  ;;  %v508_v34 = vor.u32 %v686_v28, %v505_v29  ;;  %v723_v35 = vld [vmem:[#allocation6 + $0x30] sm:$0xff]  ;;  %v722_v37 = vld [vmem:[#allocation6 + $0x28] sm:$0xff]  ;;  %s832_s0 = smov [#allocation8]   ;;  %s482_s29 = sshll.u32 %s868_s3, 4  ;;  %s483_s29 = int_to_ptr.hbm [resolvable:$true] %s482_s29 }
  0x23   :  { %250 = vmatpush.bf16.msra.mxu0 %v528_v62  ;;  %275 = vmatpush.bf16.msra.mxu2 %v552_v1  ;;  %v732_v31 = vld [vmem:[#allocation6 + $0x78] sm:$0xff]  ;;  %v731_v36 = vld [vmem:[#allocation6 + $0x70] sm:$0xff]  ;;  %v730_v38 = vld [vmem:[#allocation6 + $0x68] sm:$0xff]  ;;  %s480_s26 = sshll.u32 %s832_s0, 4  ;;  %s481_s26 = int_to_ptr.vmem [resolvable:$true] %s480_s26 }
  0x24   :  { %263 = vmatpush.bf16.msra.mxu1 %v532_v2  ;;  %288 = vmatpush.bf16.msra.mxu3 %v556_v4  ;;  %v721_v39 = vld [vmem:[#allocation6 + $0x20] sm:$0xff]  ;;  %v720_v41 = vld [vmem:[#allocation6 + $0x18] sm:$0xff]  ;;  %v719_v43 = vld [vmem:[#allocation6 + $0x10] sm:$0xff] }
  0x25   :  { %v729_v40 = vld [vmem:[#allocation6 + $0x60] sm:$0xff]  ;;  %v728_v42 = vld [vmem:[#allocation6 + $0x58] sm:$0xff]  ;;  %v727_v44 = vld [vmem:[#allocation6 + $0x50] sm:$0xff] }
  0x26   :  { %v718_v45 = vld [vmem:[#allocation6 + $0x8] sm:$0xff]  ;;  %v717_v47 = vld [vmem:[#allocation6] sm:$0xff] }
  0x27   :  { %251 = vmatpush.bf16.msra.mxu0 %v512_v10  ;;  %276 = vmatpush.bf16.msra.mxu2 %v536_v13  ;;  %v726_v46 = vld [vmem:[#allocation6 + $0x48] sm:$0xff]  ;;  %v725_v48 = vld [vmem:[#allocation6 + $0x40] sm:$0xff] }
  0x28   :  { %264 = vmatpush.bf16.msra.mxu1 %v516_v14  ;;  %289 = vmatpush.bf16.msra.mxu3 %v540_v16 }
  0x2b   :  { %252 = vmatpush.bf16.msra.mxu0 %v496_v22  ;;  %277 = vmatpush.bf16.msra.mxu2 %v520_v23 }
  0x2c   :  { %265 = vmatpush.bf16.msra.mxu1 %v500_v24  ;;  %290 = vmatpush.bf16.msra.mxu3 %v524_v25 }
  0x2e   :  { %253 = vmatmul.bf16.vlgmr.msra.gmra.mxu0 %v52_v32 }
  0x2f   :  { %442 = vmatpush.bf16.msrb.mxu0 %v724_v30  ;;  %266 = vmatmul.bf16.vlgmr.msra.gmra.mxu1 %v52_v32 }
  0x30   :  { %455 = vmatpush.bf16.msrb.mxu1 %v732_v31  ;;  %278 = vmatpush.bf16.msra.mxu2 %v504_v33 }
  0x31   :  { %291 = vmatpush.bf16.msra.mxu3 %v508_v34 }
  0x33   :  { %279 = vmatmul.bf16.vlgmr.msra.gmra.mxu2 %v52_v32  ;;  %443 = vmatpush.bf16.msrb.mxu0 %v723_v35 }
  0x34   :  { %292 = vmatmul.bf16.vlgmr.msra.gmra.mxu3 %v52_v32  ;;  %456 = vmatpush.bf16.msrb.mxu1 %v731_v36 }
  0x37   :  { %444 = vmatpush.bf16.msrb.mxu0 %v722_v37 }
  0x38   :  { %457 = vmatpush.bf16.msrb.mxu1 %v730_v38 }
  0x3b   :  { %445 = vmatpush.bf16.msrb.mxu0 %v721_v39 }
  0x3c   :  { %458 = vmatpush.bf16.msrb.mxu1 %v729_v40 }
  0x3f   :  { %446 = vmatpush.bf16.msrb.mxu0 %v720_v41 }
  0x40   :  { %459 = vmatpush.bf16.msrb.mxu1 %v728_v42 }
  0x43   :  { %447 = vmatpush.bf16.msrb.mxu0 %v719_v43 }
  0x44   :  { %460 = vmatpush.bf16.msrb.mxu1 %v727_v44 }
  0x47   :  { %448 = vmatpush.bf16.msrb.mxu0 %v718_v45 }
  0x48   :  { %461 = vmatpush.bf16.msrb.mxu1 %v726_v46 }
  0x4b   :  { %449 = vmatpush.bf16.msrb.mxu0 %v717_v47 }
  0x4c   :  { %462 = vmatpush.bf16.msrb.mxu1 %v725_v48 }
  0xab   :  { %v254_v49 = vpop.f32.mrf.mxu0 }
  0xac   :  { %v297_v50 = vsub.f32 0.0, %v254_v49  ;;  %v267_v51 = vpop.f32.mrf.mxu1 }
  0xad   :  { %v298_v52 = vsub.f32 0.0, %v267_v51 }
  0xae   :  { %v299_v53 = vmul.f32 1.442695, %v297_v50 }
  0xaf   :  { %v301_v54 = vmul.f32 1.442695, %v298_v52 }
  0xb0   :  { %740 = vpow2.f32 %v299_v53 }
  0xb1   :  { %742 = vpow2.f32 %v301_v54 }
  0xb3   :  { %v256_v55 = vpop.f32.mrf.mxu0 }
  0xb4   :  { %v269_v56 = vpop.f32.mrf.mxu1 }
  0xb6   :  { %v280_v57 = vpop.f32.mrf.mxu2  ;;  %v741_v58 = vpop.eup %740 }
  0xb7   :  { %v293_v59 = vpop.f32.mrf.mxu3  ;;  %v743_v60 = vpop.eup %742  ;;  %v303_v61 = vadd.f32 1.0, %v741_v58 }
  0xb8   :  { %v304_v62 = vadd.f32 1.0, %v743_v60 }
  0xb9   :  { %744 = vrcp.f32 %v303_v61 }
  0xba   :  { %746 = vrcp.f32 %v304_v62 }
  0xbe   :  { %v282_v63 = vpop.f32.mrf.mxu2 }
  0xbf   :  { %v295_v0 = vpop.f32.mrf.mxu3  ;;  %v745_v1 = vpop.eup %744 }
  0xc0   :  { %v747_v2 = vpop.eup %746  ;;  %v307_v3 = vmul.f32 %v745_v1, %v254_v49 }
  0xc1   :  { %v308_v4 = vmul.f32 %v747_v2, %v267_v51 }
  0xc2   :  { %v309_v5 = vmul.f32 %v307_v3, %v280_v57 }
  0xc3   :  { %v310_v6 = vmul.f32 %v308_v4, %v293_v59 }
  0xc4   :  { %v312_v7 = vpack.c.bf16 %v309_v5, %v309_v5 }
  0xc5   :  { %v313_v8 = vpack.c.bf16 %v310_v6, %v310_v6 }
  0xc6   :  { %450 = vmatmul.bf16.vlgmr.msrb.gmra.mxu0 %v312_v7 }
  0xc7   :  { %463 = vmatmul.bf16.vlgmr.msrb.gmra.mxu1 %v313_v8 }
 0x143   :  { %v451_v9 = vpop.f32.mrf.mxu0 }
 0x144   :  { %v464_v10 = vpop.f32.mrf.mxu1 }
 0x145   :  { %v465_v11 = vadd.f32 %v464_v10, %v451_v9 }
 0x147   :  { %474 = vst [vmem:[#allocation8] sm:$0xff] %v465_v11 }
 0x148   :  { %485 = dma.vmem_to_hbm [thread:$0]  %s481_s26, 128, %s483_s29, [#allocation5]  }
 0x14b   :  { %v453_v12 = vpop.f32.mrf.mxu0 }
 0x14c   :  { %v466_v13 = vpop.f32.mrf.mxu1 }
 0x14d   :  { %824 = dma.done.wait [#allocation5], 128  }
 0x14e   :  { %825 = vsyncadd [#allocation5], 4294967168 }
 0x14f   :  { %490 = vsyncpa [#allocation4], 1 }
 0x150   :  { %491 = vsyncpa [#allocation7], 1 }
 0x151   :  { %492 = vsyncpa [#allocation5], 1 }

</bundles_post_ra>
